<compile_context>
chip_gen: v6e
topology: v6e:2x2x1
jax: 0.10.0
libtpu: 0.0.40
codegen_flags: <defaults>
</compile_context>

<pallas_src>
import functools

import jax
import jax.numpy as jnp
from jax.experimental import pallas as pl
from jax.experimental.pallas import tpu as pltpu

KH = KW = 3  # 3x3 convs, padding=1 (SAME), stride=1


def _residual_block_kernel(x_ref, w1_ref, b1_ref, w2_ref, b2_ref, o_ref,
                           pad_ref, col_ref, *, H, W, PAD):
    # Per grid step (one batch element):
    #   x_ref  : (1, C, H*W)        input, channels on sublanes, spatial on lanes
    #   w*_ref : (C, 9*C)           folded conv weights, columns (tap-major, cin-minor)
    #   b*_ref : (C, 1)             biases
    #   o_ref  : (1, C, H*W)        output
    #   pad_ref: (C, H*W + 2*PAD)   VMEM scratch with zero halo on both sides
    #   col_ref: (9*C, H*W)         VMEM im2col buffer
    C = x_ref.shape[1]
    HW = H * W

    # Zero only the halo regions (lane-aligned stores). The interior is fully
    # overwritten before each conv, so no cross-step state is assumed.
    pad_ref[:, :PAD] = jnp.zeros((C, PAD), jnp.float32)
    pad_ref[:, PAD + HW:] = jnp.zeros((C, PAD), jnp.float32)

    # Column-edge masks over the flattened spatial (lane) axis. Row (y) edges
    # are handled automatically by the zero halo in pad_ref.
    xc = jax.lax.broadcasted_iota(jnp.int32, (1, HW), 1) % W
    not_left = xc != 0            # where a dx==0 tap is valid
    not_right = xc != (W - 1)     # where a dx==2 tap is valid

    def conv3x3(a, wmat, bias):
        # a: (C, HW) resident activations.
        pad_ref[:, PAD:PAD + HW] = a          # lane-aligned interior store
        for dy in range(KH):
            for dx in range(KW):
                s = (dy - 1) * W + (dx - 1)   # flattened-spatial shift (static)
                patch = pad_ref[:, PAD + s:PAD + s + HW]
                if dx == 0:
                    patch = jnp.where(not_left, patch, 0.0)
                elif dx == KW - 1:
                    patch = jnp.where(not_right, patch, 0.0)
                tap = dy * KW + dx
                col_ref[tap * C:(tap + 1) * C, :] = patch
        # Single MXU matmul per conv: (C, 9C) @ (9C, HW) -> (C, HW)
        return jnp.dot(wmat, col_ref[...],
                       preferred_element_type=jnp.float32) + bias

    x = x_ref[0]                                                  # (C, HW)
    h = jnp.maximum(conv3x3(x, w1_ref[...], b1_ref[...]), 0.0)    # conv1 + bias + ReLU
    y = conv3x3(h, w2_ref[...], b2_ref[...])                      # conv2 + bias
    o_ref[0] = (y + x).astype(o_ref.dtype)                        # residual add


def residual_block(x_nchw, w1_oihw, b1, w2_oihw, b2):
    """Pallas implementation of ResidualBlock([Conv3x3, ReLU, Conv3x3]).

    x_nchw: (N, C, H, W) float32 (PyTorch layout).
    w*_oihw: (Cout, Cin, 3, 3) float32 (PyTorch Conv2d layout).
    Returns (N, C, H, W).
    """
    N, C, H, W = x_nchw.shape
    HW = H * W
    PAD = max(128, ((W + 1 + 127) // 128) * 128)   # lane-aligned halo, >= W+1

    # Channels-on-sublanes / flattened-spatial-on-lanes: just a reshape of NCHW.
    x = x_nchw.reshape(N, C, HW).astype(jnp.float32)
    # (Cout, Cin, 3, 3) -> (Cout, 3, 3, Cin) -> (Cout, 9*Cin): tap-major columns
    # matching the im2col row order used in the kernel.
    w1m = jnp.transpose(w1_oihw, (0, 2, 3, 1)).reshape(C, KH * KW * C).astype(jnp.float32)
    w2m = jnp.transpose(w2_oihw, (0, 2, 3, 1)).reshape(C, KH * KW * C).astype(jnp.float32)
    b1k = b1.reshape(C, 1).astype(jnp.float32)
    b2k = b2.reshape(C, 1).astype(jnp.float32)

    kernel = functools.partial(_residual_block_kernel, H=H, W=W, PAD=PAD)

    out = pl.pallas_call(
        kernel,
        out_shape=jax.ShapeDtypeStruct((N, C, HW), jnp.float32),
        grid=(N,),
        in_specs=[
            pl.BlockSpec((1, C, HW), lambda n: (n, 0, 0)),
            pl.BlockSpec((C, KH * KW * C), lambda n: (0, 0)),
            pl.BlockSpec((C, 1), lambda n: (0, 0)),
            pl.BlockSpec((C, KH * KW * C), lambda n: (0, 0)),
            pl.BlockSpec((C, 1), lambda n: (0, 0)),
        ],
        out_specs=pl.BlockSpec((1, C, HW), lambda n: (n, 0, 0)),
        scratch_shapes=[
            pltpu.VMEM((C, HW + 2 * PAD), jnp.float32),   # zero-halo activation buffer
            pltpu.VMEM((KH * KW * C, HW), jnp.float32),   # im2col buffer
        ],
        compiler_params=pltpu.CompilerParams(
            dimension_semantics=("parallel",)),
    )(x, w1m, b1k, w2m, b2k)

    return out.reshape(N, C, H, W)


def ref_forward(x_nchw, w1, b1, w2, b2):
    """Pure-JAX reference matching the PyTorch ResidualBlock semantics."""
    y = jax.lax.conv_general_dilated(
        x_nchw, w1, (1, 1), 'SAME',
        dimension_numbers=('NCHW', 'OIHW', 'NCHW'))
    y = y + b1[None, :, None, None]
    y = jnp.maximum(y, 0.0)
    y = jax.lax.conv_general_dilated(
        y, w2, (1, 1), 'SAME',
        dimension_numbers=('NCHW', 'OIHW', 'NCHW'))
    y = y + b2[None, :, None, None]
    return y + x_nchw


if __name__ == "__main__":
    key = jax.random.PRNGKey(0)
    k1, k2, k3, k4, k5 = jax.random.split(key, 5)

    N, C, H, W = 2, 4, 16, 16
    x = jax.random.normal(k1, (N, C, H, W), jnp.float32)
    # deterministic synthetic parameters (PyTorch Conv2d shapes: (Cout, Cin, 3, 3))
    w1 = 0.1 * jax.random.normal(k2, (C, C, KH, KW), jnp.float32)
    b1 = 0.1 * jax.random.normal(k3, (C,), jnp.float32)
    w2 = 0.1 * jax.random.normal(k4, (C, C, KH, KW), jnp.float32)
    b2 = 0.1 * jax.random.normal(k5, (C,), jnp.float32)

    out = residual_block(x, w1, b1, w2, b2)
    jax.block_until_ready(out)

    ref = ref_forward(x, w1, b1, w2, b2)
    assert out.shape == (N, C, H, W)
    assert jnp.allclose(out, ref, atol=1e-4, rtol=1e-4), "mismatch vs reference"

    print("KERNEL_OK")
</pallas_src>

<mosaic_0001>
module attributes {stable_mosaic.version = 11 : i64} {
  func.func @_residual_block_kernel(%arg0: i32, %arg1: memref<1x4x256xf32, #tpu.memory_space<vmem>>, %arg2: memref<4x36xf32, #tpu.memory_space<vmem>>, %arg3: memref<4x1xf32, #tpu.memory_space<vmem>>, %arg4: memref<4x36xf32, #tpu.memory_space<vmem>>, %arg5: memref<4x1xf32, #tpu.memory_space<vmem>>, %arg6: memref<1x4x256xf32, #tpu.memory_space<vmem>>, %arg7: memref<4x512xf32, #tpu.memory_space<vmem>>, %arg8: memref<36x256xf32, #tpu.memory_space<vmem>>) attributes {dimension_semantics = [#tpu.dimension_semantics<parallel>], iteration_bounds = array<i64: 2>, scalar_prefetch = 0 : i64, scratch_operands = 2 : i64, tpu.core_type = #tpu.core_type<tc>, window_params = [{transform_indices = @transform_0, window_bounds = array<i64: 1, 4, 256>}, {pipeline_mode = #tpu.pipeline_mode<synchronous>, transform_indices = @transform_1, window_bounds = array<i64: 4, 36>}, {pipeline_mode = #tpu.pipeline_mode<synchronous>, transform_indices = @transform_2, window_bounds = array<i64: 4, 1>}, {pipeline_mode = #tpu.pipeline_mode<synchronous>, transform_indices = @transform_3, window_bounds = array<i64: 4, 36>}, {pipeline_mode = #tpu.pipeline_mode<synchronous>, transform_indices = @transform_4, window_bounds = array<i64: 4, 1>}, {transform_indices = @transform_5, window_bounds = array<i64: 1, 4, 256>}]} {
    %cst = arith.constant 0.000000e+00 : f32
    %0 = vector.broadcast %cst : f32 to vector<4x128xf32>
    %c0 = arith.constant 0 : index
    %c0_0 = arith.constant 0 : index
    %1 = vector.load %arg7[%c0, %c0_0] : memref<4x512xf32, #tpu.memory_space<vmem>>, vector<4x128xf32>
    tpu.vector_store %arg7[%c0, %c0_0], %0 {strides = array<i32>} : memref<4x512xf32, #tpu.memory_space<vmem>>, vector<4x128xf32>,
    %cst_1 = arith.constant 0.000000e+00 : f32
    %2 = vector.broadcast %cst_1 : f32 to vector<4x128xf32>
    %c0_2 = arith.constant 0 : index
    %c384 = arith.constant 384 : index
    %3 = vector.load %arg7[%c0_2, %c384] : memref<4x512xf32, #tpu.memory_space<vmem>>, vector<4x128xf32>
    tpu.vector_store %arg7[%c0_2, %c384], %2 {strides = array<i32>} : memref<4x512xf32, #tpu.memory_space<vmem>>, vector<4x128xf32>,
    %4 = tpu.iota {dimensions = array<i32: 1>} : vector<1x256xi32>
    %c16_i32 = arith.constant 16 : i32
    %c0_i32 = arith.constant 0 : i32
    %5 = arith.cmpi eq, %c16_i32, %c0_i32 : i32
    %c1_i32 = arith.constant 1 : i32
    %6 = arith.select %5, %c1_i32, %c16_i32 : i32
    %7 = vector.broadcast %6 : i32 to vector<1x256xi32>
    %8 = arith.remsi %4, %7 : vector<1x256xi32>
    %c0_i32_3 = arith.constant 0 : i32
    %9 = vector.broadcast %c0_i32_3 : i32 to vector<1x256xi32>
    %10 = arith.cmpi ne, %8, %9 : vector<1x256xi32>
    %c0_i32_4 = arith.constant 0 : i32
    %11 = vector.broadcast %c0_i32_4 : i32 to vector<1x256xi32>
    %12 = arith.cmpi slt, %8, %11 : vector<1x256xi32>
    %c0_i32_5 = arith.constant 0 : i32
    %13 = arith.cmpi slt, %6, %c0_i32_5 : i32
    %14 = vector.broadcast %13 : i1 to vector<1x256xi1>
    %15 = vector.broadcast %14 : vector<1x256xi1> to vector<1x256xi1>
    %16 = arith.xori %12, %15 : vector<1x256xi1>
    %17 = arith.andi %16, %10 : vector<1x256xi1>
    %18 = vector.broadcast %6 : i32 to vector<1x256xi32>
    %19 = arith.addi %8, %18 : vector<1x256xi32>
    %20 = arith.select %17, %19, %8 : vector<1x256xi1>, vector<1x256xi32>
    %c0_i32_6 = arith.constant 0 : i32
    %21 = vector.broadcast %c0_i32_6 : i32 to vector<1x256xi32>
    %22 = arith.cmpi ne, %20, %21 : vector<1x256xi32>
    %c15_i32 = arith.constant 15 : i32
    %23 = vector.broadcast %c15_i32 : i32 to vector<1x256xi32>
    %24 = arith.cmpi ne, %20, %23 : vector<1x256xi32>
    %c0_7 = arith.constant 0 : index
    %c0_8 = arith.constant 0 : index
    %c0_9 = arith.constant 0 : index
    %25 = vector.load %arg1[%c0_7, %c0_8, %c0_9] : memref<1x4x256xf32, #tpu.memory_space<vmem>>, vector<1x4x256xf32>
    %26 = vector.shape_cast %25 : vector<1x4x256xf32> to vector<4x256xf32>
    %c0_10 = arith.constant 0 : index
    %c0_11 = arith.constant 0 : index
    %27 = vector.load %arg2[%c0_10, %c0_11] : memref<4x36xf32, #tpu.memory_space<vmem>>, vector<4x36xf32>
    %c0_12 = arith.constant 0 : index
    %c0_13 = arith.constant 0 : index
    %28 = vector.load %arg3[%c0_12, %c0_13] : memref<4x1xf32, #tpu.memory_space<vmem>>, vector<4x1xf32>
    %c0_14 = arith.constant 0 : index
    %c128 = arith.constant 128 : index
    %29 = vector.load %arg7[%c0_14, %c128] : memref<4x512xf32, #tpu.memory_space<vmem>>, vector<4x256xf32>
    tpu.vector_store %arg7[%c0_14, %c128], %26 {strides = array<i32>} : memref<4x512xf32, #tpu.memory_space<vmem>>, vector<4x256xf32>,
    %c0_15 = arith.constant 0 : index
    %c111 = arith.constant 111 : index
    %30 = vector.load %arg7[%c0_15, %c111] : memref<4x512xf32, #tpu.memory_space<vmem>>, vector<4x256xf32>
    %cst_16 = arith.constant 0.000000e+00 : f32
    %31 = vector.shape_cast %22 : vector<1x256xi1> to vector<1x256xi1>
    %32 = vector.broadcast %31 : vector<1x256xi1> to vector<4x256xi1>
    %33 = vector.broadcast %cst_16 : f32 to vector<4x256xf32>
    %34 = arith.select %32, %30, %33 : vector<4x256xi1>, vector<4x256xf32>
    %c0_17 = arith.constant 0 : index
    %c0_18 = arith.constant 0 : index
    %35 = vector.load %arg8[%c0_17, %c0_18] : memref<36x256xf32, #tpu.memory_space<vmem>>, vector<4x256xf32>
    tpu.vector_store %arg8[%c0_17, %c0_18], %34 {strides = array<i32>} : memref<36x256xf32, #tpu.memory_space<vmem>>, vector<4x256xf32>,
    %c0_19 = arith.constant 0 : index
    %c112 = arith.constant 112 : index
    %36 = vector.load %arg7[%c0_19, %c112] : memref<4x512xf32, #tpu.memory_space<vmem>>, vector<4x256xf32>
    %c4 = arith.constant 4 : index
    %c0_20 = arith.constant 0 : index
    %37 = vector.load %arg8[%c4, %c0_20] : memref<36x256xf32, #tpu.memory_space<vmem>>, vector<4x256xf32>
    tpu.vector_store %arg8[%c4, %c0_20], %36 {strides = array<i32>} : memref<36x256xf32, #tpu.memory_space<vmem>>, vector<4x256xf32>,
    %c0_21 = arith.constant 0 : index
    %c113 = arith.constant 113 : index
    %38 = vector.load %arg7[%c0_21, %c113] : memref<4x512xf32, #tpu.memory_space<vmem>>, vector<4x256xf32>
    %cst_22 = arith.constant 0.000000e+00 : f32
    %39 = vector.shape_cast %24 : vector<1x256xi1> to vector<1x256xi1>
    %40 = vector.broadcast %39 : vector<1x256xi1> to vector<4x256xi1>
    %41 = vector.broadcast %cst_22 : f32 to vector<4x256xf32>
    %42 = arith.select %40, %38, %41 : vector<4x256xi1>, vector<4x256xf32>
    %c8 = arith.constant 8 : index
    %c0_23 = arith.constant 0 : index
    %43 = vector.load %arg8[%c8, %c0_23] : memref<36x256xf32, #tpu.memory_space<vmem>>, vector<4x256xf32>
    tpu.vector_store %arg8[%c8, %c0_23], %42 {strides = array<i32>} : memref<36x256xf32, #tpu.memory_space<vmem>>, vector<4x256xf32>,
    %c0_24 = arith.constant 0 : index
    %c127 = arith.constant 127 : index
    %44 = vector.load %arg7[%c0_24, %c127] : memref<4x512xf32, #tpu.memory_space<vmem>>, vector<4x256xf32>
    %cst_25 = arith.constant 0.000000e+00 : f32
    %45 = vector.shape_cast %22 : vector<1x256xi1> to vector<1x256xi1>
    %46 = vector.broadcast %45 : vector<1x256xi1> to vector<4x256xi1>
    %47 = vector.broadcast %cst_25 : f32 to vector<4x256xf32>
    %48 = arith.select %46, %44, %47 : vector<4x256xi1>, vector<4x256xf32>
    %c12 = arith.constant 12 : index
    %c0_26 = arith.constant 0 : index
    %49 = vector.load %arg8[%c12, %c0_26] : memref<36x256xf32, #tpu.memory_space<vmem>>, vector<4x256xf32>
    tpu.vector_store %arg8[%c12, %c0_26], %48 {strides = array<i32>} : memref<36x256xf32, #tpu.memory_space<vmem>>, vector<4x256xf32>,
    %c0_27 = arith.constant 0 : index
    %c128_28 = arith.constant 128 : index
    %50 = vector.load %arg7[%c0_27, %c128_28] : memref<4x512xf32, #tpu.memory_space<vmem>>, vector<4x256xf32>
    %c16 = arith.constant 16 : index
    %c0_29 = arith.constant 0 : index
    %51 = vector.load %arg8[%c16, %c0_29] : memref<36x256xf32, #tpu.memory_space<vmem>>, vector<4x256xf32>
    tpu.vector_store %arg8[%c16, %c0_29], %50 {strides = array<i32>} : memref<36x256xf32, #tpu.memory_space<vmem>>, vector<4x256xf32>,
    %c0_30 = arith.constant 0 : index
    %c129 = arith.constant 129 : index
    %52 = vector.load %arg7[%c0_30, %c129] : memref<4x512xf32, #tpu.memory_space<vmem>>, vector<4x256xf32>
    %cst_31 = arith.constant 0.000000e+00 : f32
    %53 = vector.shape_cast %24 : vector<1x256xi1> to vector<1x256xi1>
    %54 = vector.broadcast %53 : vector<1x256xi1> to vector<4x256xi1>
    %55 = vector.broadcast %cst_31 : f32 to vector<4x256xf32>
    %56 = arith.select %54, %52, %55 : vector<4x256xi1>, vector<4x256xf32>
    %c20 = arith.constant 20 : index
    %c0_32 = arith.constant 0 : index
    %57 = vector.load %arg8[%c20, %c0_32] : memref<36x256xf32, #tpu.memory_space<vmem>>, vector<4x256xf32>
    tpu.vector_store %arg8[%c20, %c0_32], %56 {strides = array<i32>} : memref<36x256xf32, #tpu.memory_space<vmem>>, vector<4x256xf32>,
    %c0_33 = arith.constant 0 : index
    %c143 = arith.constant 143 : index
    %58 = vector.load %arg7[%c0_33, %c143] : memref<4x512xf32, #tpu.memory_space<vmem>>, vector<4x256xf32>
    %cst_34 = arith.constant 0.000000e+00 : f32
    %59 = vector.shape_cast %22 : vector<1x256xi1> to vector<1x256xi1>
    %60 = vector.broadcast %59 : vector<1x256xi1> to vector<4x256xi1>
    %61 = vector.broadcast %cst_34 : f32 to vector<4x256xf32>
    %62 = arith.select %60, %58, %61 : vector<4x256xi1>, vector<4x256xf32>
    %c24 = arith.constant 24 : index
    %c0_35 = arith.constant 0 : index
    %63 = vector.load %arg8[%c24, %c0_35] : memref<36x256xf32, #tpu.memory_space<vmem>>, vector<4x256xf32>
    tpu.vector_store %arg8[%c24, %c0_35], %62 {strides = array<i32>} : memref<36x256xf32, #tpu.memory_space<vmem>>, vector<4x256xf32>,
    %c0_36 = arith.constant 0 : index
    %c144 = arith.constant 144 : index
    %64 = vector.load %arg7[%c0_36, %c144] : memref<4x512xf32, #tpu.memory_space<vmem>>, vector<4x256xf32>
    %c28 = arith.constant 28 : index
    %c0_37 = arith.constant 0 : index
    %65 = vector.load %arg8[%c28, %c0_37] : memref<36x256xf32, #tpu.memory_space<vmem>>, vector<4x256xf32>
    tpu.vector_store %arg8[%c28, %c0_37], %64 {strides = array<i32>} : memref<36x256xf32, #tpu.memory_space<vmem>>, vector<4x256xf32>,
    %c0_38 = arith.constant 0 : index
    %c145 = arith.constant 145 : index
    %66 = vector.load %arg7[%c0_38, %c145] : memref<4x512xf32, #tpu.memory_space<vmem>>, vector<4x256xf32>
    %cst_39 = arith.constant 0.000000e+00 : f32
    %67 = vector.shape_cast %24 : vector<1x256xi1> to vector<1x256xi1>
    %68 = vector.broadcast %67 : vector<1x256xi1> to vector<4x256xi1>
    %69 = vector.broadcast %cst_39 : f32 to vector<4x256xf32>
    %70 = arith.select %68, %66, %69 : vector<4x256xi1>, vector<4x256xf32>
    %c32 = arith.constant 32 : index
    %c0_40 = arith.constant 0 : index
    %71 = vector.load %arg8[%c32, %c0_40] : memref<36x256xf32, #tpu.memory_space<vmem>>, vector<4x256xf32>
    tpu.vector_store %arg8[%c32, %c0_40], %70 {strides = array<i32>} : memref<36x256xf32, #tpu.memory_space<vmem>>, vector<4x256xf32>,
    %c0_41 = arith.constant 0 : index
    %c0_42 = arith.constant 0 : index
    %72 = vector.load %arg8[%c0_41, %c0_42] : memref<36x256xf32, #tpu.memory_space<vmem>>, vector<36x256xf32>
    %cst_43 = arith.constant dense<0.000000e+00> : vector<4x256xf32>
    %73 = tpu.matmul %27, %72, %cst_43 {dimension_numbers = #tpu.dot_dimension_numbers<[1], [0], [0], [1], [0, 0, 1, 1], [], []>} : vector<4x36xf32>, vector<36x256xf32>, vector<4x256xf32> -> vector<4x256xf32>
    %74 = vector.broadcast %28 : vector<4x1xf32> to vector<4x256xf32>
    %75 = arith.addf %73, %74 : vector<4x256xf32>
    %cst_44 = arith.constant 0.000000e+00 : f32
    %76 = vector.broadcast %cst_44 : f32 to vector<4x256xf32>
    %77 = arith.maximumf %75, %76 : vector<4x256xf32>
    %c0_45 = arith.constant 0 : index
    %c0_46 = arith.constant 0 : index
    %78 = vector.load %arg4[%c0_45, %c0_46] : memref<4x36xf32, #tpu.memory_space<vmem>>, vector<4x36xf32>
    %c0_47 = arith.constant 0 : index
    %c0_48 = arith.constant 0 : index
    %79 = vector.load %arg5[%c0_47, %c0_48] : memref<4x1xf32, #tpu.memory_space<vmem>>, vector<4x1xf32>
    %c0_49 = arith.constant 0 : index
    %c128_50 = arith.constant 128 : index
    %80 = vector.load %arg7[%c0_49, %c128_50] : memref<4x512xf32, #tpu.memory_space<vmem>>, vector<4x256xf32>
    tpu.vector_store %arg7[%c0_49, %c128_50], %77 {strides = array<i32>} : memref<4x512xf32, #tpu.memory_space<vmem>>, vector<4x256xf32>,
    %c0_51 = arith.constant 0 : index
    %c111_52 = arith.constant 111 : index
    %81 = vector.load %arg7[%c0_51, %c111_52] : memref<4x512xf32, #tpu.memory_space<vmem>>, vector<4x256xf32>
    %cst_53 = arith.constant 0.000000e+00 : f32
    %82 = vector.shape_cast %22 : vector<1x256xi1> to vector<1x256xi1>
    %83 = vector.broadcast %82 : vector<1x256xi1> to vector<4x256xi1>
    %84 = vector.broadcast %cst_53 : f32 to vector<4x256xf32>
    %85 = arith.select %83, %81, %84 : vector<4x256xi1>, vector<4x256xf32>
    %c0_54 = arith.constant 0 : index
    %c0_55 = arith.constant 0 : index
    %86 = vector.load %arg8[%c0_54, %c0_55] : memref<36x256xf32, #tpu.memory_space<vmem>>, vector<4x256xf32>
    tpu.vector_store %arg8[%c0_54, %c0_55], %85 {strides = array<i32>} : memref<36x256xf32, #tpu.memory_space<vmem>>, vector<4x256xf32>,
    %c0_56 = arith.constant 0 : index
    %c112_57 = arith.constant 112 : index
    %87 = vector.load %arg7[%c0_56, %c112_57] : memref<4x512xf32, #tpu.memory_space<vmem>>, vector<4x256xf32>
    %c4_58 = arith.constant 4 : index
    %c0_59 = arith.constant 0 : index
    %88 = vector.load %arg8[%c4_58, %c0_59] : memref<36x256xf32, #tpu.memory_space<vmem>>, vector<4x256xf32>
    tpu.vector_store %arg8[%c4_58, %c0_59], %87 {strides = array<i32>} : memref<36x256xf32, #tpu.memory_space<vmem>>, vector<4x256xf32>,
    %c0_60 = arith.constant 0 : index
    %c113_61 = arith.constant 113 : index
    %89 = vector.load %arg7[%c0_60, %c113_61] : memref<4x512xf32, #tpu.memory_space<vmem>>, vector<4x256xf32>
    %cst_62 = arith.constant 0.000000e+00 : f32
    %90 = vector.shape_cast %24 : vector<1x256xi1> to vector<1x256xi1>
    %91 = vector.broadcast %90 : vector<1x256xi1> to vector<4x256xi1>
    %92 = vector.broadcast %cst_62 : f32 to vector<4x256xf32>
    %93 = arith.select %91, %89, %92 : vector<4x256xi1>, vector<4x256xf32>
    %c8_63 = arith.constant 8 : index
    %c0_64 = arith.constant 0 : index
    %94 = vector.load %arg8[%c8_63, %c0_64] : memref<36x256xf32, #tpu.memory_space<vmem>>, vector<4x256xf32>
    tpu.vector_store %arg8[%c8_63, %c0_64], %93 {strides = array<i32>} : memref<36x256xf32, #tpu.memory_space<vmem>>, vector<4x256xf32>,
    %c0_65 = arith.constant 0 : index
    %c127_66 = arith.constant 127 : index
    %95 = vector.load %arg7[%c0_65, %c127_66] : memref<4x512xf32, #tpu.memory_space<vmem>>, vector<4x256xf32>
    %cst_67 = arith.constant 0.000000e+00 : f32
    %96 = vector.shape_cast %22 : vector<1x256xi1> to vector<1x256xi1>
    %97 = vector.broadcast %96 : vector<1x256xi1> to vector<4x256xi1>
    %98 = vector.broadcast %cst_67 : f32 to vector<4x256xf32>
    %99 = arith.select %97, %95, %98 : vector<4x256xi1>, vector<4x256xf32>
    %c12_68 = arith.constant 12 : index
    %c0_69 = arith.constant 0 : index
    %100 = vector.load %arg8[%c12_68, %c0_69] : memref<36x256xf32, #tpu.memory_space<vmem>>, vector<4x256xf32>
    tpu.vector_store %arg8[%c12_68, %c0_69], %99 {strides = array<i32>} : memref<36x256xf32, #tpu.memory_space<vmem>>, vector<4x256xf32>,
    %c0_70 = arith.constant 0 : index
    %c128_71 = arith.constant 128 : index
    %101 = vector.load %arg7[%c0_70, %c128_71] : memref<4x512xf32, #tpu.memory_space<vmem>>, vector<4x256xf32>
    %c16_72 = arith.constant 16 : index
    %c0_73 = arith.constant 0 : index
    %102 = vector.load %arg8[%c16_72, %c0_73] : memref<36x256xf32, #tpu.memory_space<vmem>>, vector<4x256xf32>
    tpu.vector_store %arg8[%c16_72, %c0_73], %101 {strides = array<i32>} : memref<36x256xf32, #tpu.memory_space<vmem>>, vector<4x256xf32>,
    %c0_74 = arith.constant 0 : index
    %c129_75 = arith.constant 129 : index
    %103 = vector.load %arg7[%c0_74, %c129_75] : memref<4x512xf32, #tpu.memory_space<vmem>>, vector<4x256xf32>
    %cst_76 = arith.constant 0.000000e+00 : f32
    %104 = vector.shape_cast %24 : vector<1x256xi1> to vector<1x256xi1>
    %105 = vector.broadcast %104 : vector<1x256xi1> to vector<4x256xi1>
    %106 = vector.broadcast %cst_76 : f32 to vector<4x256xf32>
    %107 = arith.select %105, %103, %106 : vector<4x256xi1>, vector<4x256xf32>
    %c20_77 = arith.constant 20 : index
    %c0_78 = arith.constant 0 : index
    %108 = vector.load %arg8[%c20_77, %c0_78] : memref<36x256xf32, #tpu.memory_space<vmem>>, vector<4x256xf32>
    tpu.vector_store %arg8[%c20_77, %c0_78], %107 {strides = array<i32>} : memref<36x256xf32, #tpu.memory_space<vmem>>, vector<4x256xf32>,
    %c0_79 = arith.constant 0 : index
    %c143_80 = arith.constant 143 : index
    %109 = vector.load %arg7[%c0_79, %c143_80] : memref<4x512xf32, #tpu.memory_space<vmem>>, vector<4x256xf32>
    %cst_81 = arith.constant 0.000000e+00 : f32
    %110 = vector.shape_cast %22 : vector<1x256xi1> to vector<1x256xi1>
    %111 = vector.broadcast %110 : vector<1x256xi1> to vector<4x256xi1>
    %112 = vector.broadcast %cst_81 : f32 to vector<4x256xf32>
    %113 = arith.select %111, %109, %112 : vector<4x256xi1>, vector<4x256xf32>
    %c24_82 = arith.constant 24 : index
    %c0_83 = arith.constant 0 : index
    %114 = vector.load %arg8[%c24_82, %c0_83] : memref<36x256xf32, #tpu.memory_space<vmem>>, vector<4x256xf32>
    tpu.vector_store %arg8[%c24_82, %c0_83], %113 {strides = array<i32>} : memref<36x256xf32, #tpu.memory_space<vmem>>, vector<4x256xf32>,
    %c0_84 = arith.constant 0 : index
    %c144_85 = arith.constant 144 : index
    %115 = vector.load %arg7[%c0_84, %c144_85] : memref<4x512xf32, #tpu.memory_space<vmem>>, vector<4x256xf32>
    %c28_86 = arith.constant 28 : index
    %c0_87 = arith.constant 0 : index
    %116 = vector.load %arg8[%c28_86, %c0_87] : memref<36x256xf32, #tpu.memory_space<vmem>>, vector<4x256xf32>
    tpu.vector_store %arg8[%c28_86, %c0_87], %115 {strides = array<i32>} : memref<36x256xf32, #tpu.memory_space<vmem>>, vector<4x256xf32>,
    %c0_88 = arith.constant 0 : index
    %c145_89 = arith.constant 145 : index
    %117 = vector.load %arg7[%c0_88, %c145_89] : memref<4x512xf32, #tpu.memory_space<vmem>>, vector<4x256xf32>
    %cst_90 = arith.constant 0.000000e+00 : f32
    %118 = vector.shape_cast %24 : vector<1x256xi1> to vector<1x256xi1>
    %119 = vector.broadcast %118 : vector<1x256xi1> to vector<4x256xi1>
    %120 = vector.broadcast %cst_90 : f32 to vector<4x256xf32>
    %121 = arith.select %119, %117, %120 : vector<4x256xi1>, vector<4x256xf32>
    %c32_91 = arith.constant 32 : index
    %c0_92 = arith.constant 0 : index
    %122 = vector.load %arg8[%c32_91, %c0_92] : memref<36x256xf32, #tpu.memory_space<vmem>>, vector<4x256xf32>
    tpu.vector_store %arg8[%c32_91, %c0_92], %121 {strides = array<i32>} : memref<36x256xf32, #tpu.memory_space<vmem>>, vector<4x256xf32>,
    %c0_93 = arith.constant 0 : index
    %c0_94 = arith.constant 0 : index
    %123 = vector.load %arg8[%c0_93, %c0_94] : memref<36x256xf32, #tpu.memory_space<vmem>>, vector<36x256xf32>
    %cst_95 = arith.constant dense<0.000000e+00> : vector<4x256xf32>
    %124 = tpu.matmul %78, %123, %cst_95 {dimension_numbers = #tpu.dot_dimension_numbers<[1], [0], [0], [1], [0, 0, 1, 1], [], []>} : vector<4x36xf32>, vector<36x256xf32>, vector<4x256xf32> -> vector<4x256xf32>
    %125 = vector.broadcast %79 : vector<4x1xf32> to vector<4x256xf32>
    %126 = arith.addf %124, %125 : vector<4x256xf32>
    %127 = arith.addf %126, %26 : vector<4x256xf32>
    %c0_96 = arith.constant 0 : index
    %c0_97 = arith.constant 0 : index
    %c0_98 = arith.constant 0 : index
    %128 = vector.load %arg6[%c0_96, %c0_97, %c0_98] : memref<1x4x256xf32, #tpu.memory_space<vmem>>, vector<1x4x256xf32>
    %129 = vector.shape_cast %128 : vector<1x4x256xf32> to vector<4x256xf32>
    %130 = vector.shape_cast %127 : vector<4x256xf32> to vector<1x4x256xf32>
    tpu.vector_store %arg6[%c0_96, %c0_97, %c0_98], %130 {strides = array<i32>} : memref<1x4x256xf32, #tpu.memory_space<vmem>>, vector<1x4x256xf32>,
    return
  }
  func.func @transform_0(%arg0: i32) -> (i32, i32, i32) {
    %c0_i32 = arith.constant 0 : i32
    %c0_i32_0 = arith.constant 0 : i32
    %c0_i32_1 = arith.constant 0 : i32
    return %arg0, %c0_i32, %c0_i32_0 : i32, i32, i32
  }
  func.func @transform_1(%arg0: i32) -> (i32, i32) {
    %c0_i32 = arith.constant 0 : i32
    %c0_i32_0 = arith.constant 0 : i32
    %c0_i32_1 = arith.constant 0 : i32
    return %c0_i32, %c0_i32_0 : i32, i32
  }
  func.func @transform_2(%arg0: i32) -> (i32, i32) {
    %c0_i32 = arith.constant 0 : i32
    %c0_i32_0 = arith.constant 0 : i32
    %c0_i32_1 = arith.constant 0 : i32
    return %c0_i32, %c0_i32_0 : i32, i32
  }
  func.func @transform_3(%arg0: i32) -> (i32, i32) {
    %c0_i32 = arith.constant 0 : i32
    %c0_i32_0 = arith.constant 0 : i32
    %c0_i32_1 = arith.constant 0 : i32
    return %c0_i32, %c0_i32_0 : i32, i32
  }
  func.func @transform_4(%arg0: i32) -> (i32, i32) {
    %c0_i32 = arith.constant 0 : i32
    %c0_i32_0 = arith.constant 0 : i32
    %c0_i32_1 = arith.constant 0 : i32
    return %c0_i32, %c0_i32_0 : i32, i32
  }
  func.func @transform_5(%arg0: i32) -> (i32, i32, i32) {
    %c0_i32 = arith.constant 0 : i32
    %c0_i32_0 = arith.constant 0 : i32
    %c0_i32_1 = arith.constant 0 : i32
    return %arg0, %c0_i32, %c0_i32_0 : i32, i32, i32
  }
}

</mosaic_0001>

<bundles_post_ra>
// kernel: tpu_custom_call.1
= control target key start
LH: loop header
LB: loop body
LE: loop exit
PB: predicated region body
PF: predicated region fallthrough
CT: control target
= control target key end

     0   :  { %10 = vsyncpa [#allocation5], 0  ;;  %s1484_s0 = inlined_call_operand.hbm [shape: f32[2,4,256], index: 0, kind: input, shape index: {}]   ;;  %s1485_s1 = inlined_call_operand.vmem [shape: f32[4,36], index: 1, kind: input, shape index: {}]   ;;  %s1486_s2 = inlined_call_operand.vmem [shape: f32[4,1], index: 2, kind: input, shape index: {}]   ;;  %s1487_s3 = inlined_call_operand.vmem [shape: f32[4,36], index: 3, kind: input, shape index: {}]   ;;  %s1488_s4 = inlined_call_operand.vmem [shape: f32[4,1], index: 4, kind: input, shape index: {}]   ;;  %s1489_s5 = inlined_call_operand.hbm [shape: f32[2,4,256], index: 5, kind: output, shape index: {}]  }
   0x1   :  { %12 = vsyncpa [#allocation5 + $0x1], 0 }
   0x2   :  { %13 = vsyncpa [#allocation6], 0 }
   0x3   :  { %15 = vsyncpa [#allocation6 + $0x1], 0  ;;  %s1153_s18 = smov 0   ;;  %s1155_s19 = smov 0  }
   0x4   :  { %s1157_s20 = smov 0   ;;  %s1159_s21 = smov 0  }
   0x5 LB: > { %s1174_s22 = sadd.s32 4294967295, %s1109_s21   ;;  %s926_s23 = sadd.s32 4294967294, %s1109_s21   ;;  %s1109_s21 = sphi %s1159_s21, %s1514_s21   ;;  %s1105_s20 = sphi %s1157_s20, %s1513_s20   ;;  %s1101_s19 = sphi %s1155_s19, %s1512_s19   ;;  %s1097_s18 = sphi %s1153_s18, %s1511_s18  }
   0x6   : > { %s1178_s24 = sadd.s32 1, %s1109_s21   ;;  %s28_s25 = sadd.s32 1, %s1105_s20 }
   0x7   : > { %s25_s26 = ssub.s32 %s1109_s21, %s1178_s24  ;;  %p35_p0 = scmp.ne.s32.totalorder %s1105_s20, %s1101_s19 }
   0x8   : > { %p26_p1 = scmp.eq.s32.totalorder %s25_s26, 0  ;;  %p36_p2 = scmp.eq.s32.totalorder %s1109_s21, 0 }
   0x9   : > { %p41_p3 = scmp.ne.s32.totalorder %s1101_s19, %s1097_s18  ;;  %p42_p4 = scmp.eq.s32.totalorder %s1174_s22, 0 }
   0xa   : > { %s1190_s27 = scalar_select %p26_p1, %s1105_s20, %s28_s25  }
   0xb   : > { %p1192_p5 = por %p36_p2, %p35_p0  ;;  %p1196_p6 = por %p42_p4, %p41_p3 }
   0xc   : > { %p149_p7 = scmp.eq.s32.totalorder %s1174_s22, 1  ;;  %p155_p8 = scmp.eq.s32.totalorder %s926_s23, 1 }
   0xd   : > { %s1493_s29 = scalar_select %p1196_p6, 1, 0 }
   0xe   : > { %p960_p10 = scmp.lt.s32.totalorder %s1109_s21, 2  ;;  %p1203_p11 = por %p149_p7, %p35_p0 }
   0xf   : > { %p1207_p12 = por %p155_p8, %p41_p3  ;;  %s187_s7 = sand.u32 1, %s1105_s20  }
  0x10   : > { %s1494_s30 = scalar_select %p1203_p11, 1, 0 }
  0x11   : > { %s1495_s6 = scalar_select %p1207_p12, 1, 0 }
  0x12   : > { %s946_s8 = sshll.u32 %s1109_s21, 7  ;;  %s929_s9 = sshll.u32 %s187_s7, 3 }
  0x13   : > { %s1216_s12 = scalar_lea.hbm %s1484_s0, %s946_s8  ;;  %s191_s13 = scalar_lea.vmem [#allocation4], %s929_s9 }
  0x14   : > { %s199_s14 = sshll.u32 %s191_s13, 4  ;;  %p1220_p13 = pnand %p960_p10, %p1192_p5  ;;  %s1224_s14 = int_to_ptr.vmem [resolvable:$true] %s199_s14 }
  0x15   : > { %s188_s16 = scalar_lea.sflag [#allocation5], %s187_s7  ;;  %s1017_s17 = scalar_lea.hbm %s1216_s12, 128 }
  0x16   : > { %p1018_p2 = scmp.ne.s32.totalorder %s1216_s12, %s1017_s17  ;;  %p1019_p3 = pneg %p1220_p13 }
  0x17   : > { %s1022_s26 = scalar_lea.hbm %s1484_s0, 256  ;;  %p1023_p5 = scmp.lt.s32.totalorder %s1216_s12, %s1484_s0 }
  0x18   : > { %p1020_p4 = pnand %p1019_p3, %p1018_p2  ;;  %p1024_p8 = scmp.lt.s32.totalorder %s1022_s26, %s1017_s17 }
  0x1a   : > { %p1021_p7 = pneg %p1020_p4  ;;  %p1025_p10 = por %p1024_p8, %p1023_p5 }
  0x1c   : > { %p1026_p9 = pnand %p1025_p10, %p1021_p7 }
  0x1e   : > { %1029 = shalt.err (!%p1026_p9)
}
  0x1f   : > { %s1030_s7 = scalar_lea.vmem %s1224_s14, 128  ;;  %s1111_s9 = smov [#allocation4]  }
  0x20   : > { %p1031_p0 = scmp.ne.s32.totalorder %s1224_s14, %s1030_s7  ;;  %s1035_s10 = sshll.u32 %s1111_s9, 4  ;;  %s1036_s10 = int_to_ptr.vmem [resolvable:$false] %s1035_s10 }
  0x21   : > { %s1037_s11 = scalar_lea.vmem %s1036_s10, 256  ;;  %p1038_p4 = scmp.lt.s32.totalorder %s1224_s14, %s1036_s10 }
  0x22   : > { %p1033_p1 = pnand %p1031_p0, %p1019_p3  ;;  %p1039_p12 = scmp.lt.s32.totalorder %s1037_s11, %s1030_s7 }
  0x24   : > { %p1034_p2 = pneg %p1033_p1  ;;  %p1040_p11 = por %p1039_p12, %p1038_p4 }
  0x26   : > { %p1041_p6 = pnand %p1040_p11, %p1034_p2 }
  0x28   : > { %1044 = shalt.err (!%p1041_p6)
}
  0x29   : > { %955 = dma.hbm_to_vmem [thread:$0]  (!%p1220_p13), %s1216_s12, 128, %s1224_s14, %s188_s16  }
  0x2a   : > { %p1497_p9 = scmp.lt.s32.totalorder %s1109_s21, 3  ;;  %p1498_p7 = scmp.ge.s32.totalorder %s1109_s21, 1 }
  0x2c   : > { %p205_p0 = pnand %p1498_p7, %p1497_p9 }
  0x2d   : > { %s1251_s13 = sand.u32 (!%p205_p0), 1, %s1101_s19   ;;  %p1499_p6 = scmp.ne.s32.totalorder (!%p205_p0), %s1493_s29, 0 }
  0x2e   : > { %208 = sbr.rel (%p205_p0) target bundleno = 815 (0x32f), region = 40  ;;  %s933_s17 = sshll.u32 (!%p205_p0), %s1251_s13, 3 }
  0x2f   : > { %s211_s23 = scalar_lea.sflag (!%p205_p0), [#allocation5], %s1251_s13  ;;  %s214_s15 = scalar_lea.vmem (!%p205_p0), [#allocation4], %s933_s17 }
  0x33   : > { %1088 = dma.done.wait (%p1499_p6), %s211_s23, 128  }
  0x34   : > { %1090 = vsyncadd (%p1499_p6), %s211_s23, 4294967168  ;;  %v1112_v0 = vmov 0.0   ;;  %v1261_v1 = vld [vmem:[%s214_s15] sm:$0xff]  ;;  %s1113_s12 = smov 111   ;;  %s1114_s29 = smov 127   ;;  %v1121_v15 = vmov 0   ;;  %v243_v17 = vlaneseq }
  0x35   : > { %242 = vst [vmem:[#allocation2 + $0xc] sm:$0xf] %v1112_v0  ;;  %241 = vst [vmem:[#allocation2] sm:$0xf] %v1112_v0  ;;  %552 = vmatprep.mubr.f32.mxu0 %v1112_v0  ;;  %824 = vmatprep.mubr.f32.mxu1 %v1112_v0  ;;  %v1268_v3 = vcombine.high %v1261_v1, %v1261_v1  ;;  %s1115_s14 = smov 112   ;;  %s1116_s16 = smov 113   ;;  %v427_v9 = vcombine.low %v1261_v1, %v1261_v1 }
  0x36   : > { %277 = vst [vmem:[#allocation2 + $0x4] sm:$0xff] %v1261_v1  ;;  %447 = vrot.lane.b32.xlu1 %v1261_v1, %s1113_s12  ;;  %375 = vst [vmem:[#allocation3 + $0x48] sm:$0xf] %v1261_v1  ;;  %s1117_s25 = smov 1   ;;  %s1118_s26 = smov 15   ;;  %1004 = vset.pattern.permute.xlu0 %v1121_v15  ;;  %v244_v18 = vand.u32 127, %v243_v17 }
  0x37   : > { %376 = vst [vmem:[#allocation3 + $0x28] sm:$0xf] %v1268_v3  ;;  %s1119_s28 = smov 17   ;;  %s1120_s8 = smov 16   ;;  %v276_v16 = vld [vmem:[%s1486_s2] sm:$0xf] }
  0x38   : > { %v245_v21 = vadd.s32 128, %v244_v18  ;;  %v250_v24 = vand.u32 15, %v244_v18  ;;  %vm388_vm0 = vcmask 1039360   ;;  %vm453_vm3 = vcmask 908288   ;;  %s842_s7 = scalar_lea.sflag [#allocation6], %s1251_s13  ;;  %p1508_p12 = scmp.ne.s32.totalorder %s1494_s30, 0 }
  0x39   : > { %vm414_vm4 = vcmask 924672   ;;  %vm435_vm7 = vcmask 916480   ;;  %vm356_vm8 = vcmask 7168   ;;  %vm481_vm9 = vcmask 1043456  }
  0x3a   : > { %382 = vrot.lane.b32.xlu1 %v1261_v1, %s1114_s29  ;;  %v257_v25 = vand.u32 15, %v245_v21  ;;  %vm1306_vm1 = vcmp.ne.s32.totalorder %v250_v24, 15  ;;  %vm1320_vm5 = vcmp.ne.s32.totalorder %v250_v24, 0  ;;  %vm336_vm10 = vcmask 121856  }
  0x3b   : > { %vm293_vm11 = vcmask 138240   ;;  %vm314_vm12 = vcmask 130048   ;;  %vm477_vm13 = vcmask 293888  }
  0x3c   : > { %v443_v2 = vld [vmem:[#allocation2 + $0xc] sm:$0xf]  ;;  %vm1310_vm2 = vcmp.ne.s32.totalorder %v257_v25, 15  ;;  %vm1324_vm6 = vcmp.ne.s32.totalorder %v257_v25, 0 }
  0x3d   : > { %451 = vrot.lane.b32.xlu0 %v443_v2, %s1113_s12  ;;  %v378_v4 = vld [vmem:[#allocation2 + $0xc] sm:$0xf]  ;;  %v345_v6 = vld [vmem:[#allocation2] sm:$0xff]  ;;  %v346_v10 = vld [vmem:[#allocation2 + $0x8] sm:$0xf] }
  0x3e   : > { %v404_v5 = vld [vmem:[#allocation2 + $0xc] sm:$0xf]  ;;  %431 = vrot.lane.b32.xlu1 %v1261_v1, %s1115_s14  ;;  %v349_v7 = vcombine.high %v345_v6, %v345_v6  ;;  %v322_v11 = vld [vmem:[#allocation2 + $0x8] sm:$0xf]  ;;  %v306_v13 = vcombine.low %v345_v6, %v345_v6 }
  0x3f   : > { %v1006_v8 = vld [vmem:[#allocation2 + $0xc] ss:$0 sps:$4 sm:$0xff]   ;;  %v279_v12 = vld [vmem:[#allocation2 + $0x8] sm:$0xf] }
  0x40   : > { %v1009_v14 = vld [vmem:[#allocation2 + $0x8] ss:$0 sps:$4 sm:$0xff]  }
  0x41   : > { %386 = vrot.lane.b32.xlu0 %v378_v4, %s1114_s29 }
  0x42   : > { %384 = vrot.lane.b32.xlu1 %v1268_v3, %s1114_s29 }
  0x45   : > { %412 = vrot.lane.b32.xlu0 %v404_v5, %s1116_s16 }
  0x46   : > { %410 = vrot.lane.b32.xlu1 %v1268_v3, %s1116_s16 }
  0x49   : > { %408 = vrot.lane.b32.xlu0 %v1261_v1, %s1116_s16 }
  0x4a   : > { %352 = vrot.lane.b32.xlu1 %v349_v7, %s1117_s25 }
  0x4d   : > { %449 = vrot.lane.b32.xlu0 %v1268_v3, %s1113_s12 }
  0x4e   : > { %429 = vrot.lane.b32.xlu1 %v427_v9, %s1115_s14 }
  0x51   : > { %433 = vrot.lane.b32.xlu0 %v1006_v8, %s1115_s14 }
  0x52   : > { %332 = vrot.lane.b32.xlu1 %v349_v7, %s1118_s26 }
  0x55   : > { %354 = vrot.lane.b32.xlu0 %v346_v10, %s1117_s25 }
  0x56   : > { %330 = vrot.lane.b32.xlu1 %v345_v6, %s1118_s26 }
  0x59   : > { %350 = vrot.lane.b32.xlu0 %v345_v6, %s1117_s25 }
  0x5a   : > { %291 = vrot.lane.b32.xlu1 %v279_v12, %s1119_s28 }
  0x5d   : > { %334 = vrot.lane.b32.xlu0 %v322_v11, %s1118_s26 }
  0x5e   : > { %310 = vrot.lane.b32.xlu1 %v345_v6, %s1120_s8 }
  0x61   : > { %289 = vrot.lane.b32.xlu0 %v349_v7, %s1119_s28 }
  0x62   : > { %308 = vrot.lane.b32.xlu1 %v306_v13, %s1120_s8 }
  0x65   : > { %287 = vrot.lane.b32.xlu0 %v345_v6, %s1119_s28 }
  0x69   : > { %312 = vrot.lane.b32.xlu0 %v1009_v14, %s1120_s8 }
  0x6d   : > { %474 = vperm.xlu0 %1004, %v276_v16  }
  0xa8   : > { %v448_v19 = vpop.permute.xlu1 %447 }
  0xac   : > { %v383_v22 = vpop.permute.xlu1 %382 }
  0xaf   : > { %v452_v20 = vpop.permute.xlu0 %451 }
  0xb0   : > { %v432_v26 = vpop.permute.xlu1 %431 }
  0xb3   : > { %v387_v23 = vpop.permute.xlu0 %386 }
  0xb4   : > { %v385_v30 = vpop.permute.xlu1 %384 }
  0xb5   : > { %v389_v32 = vsel %vm388_vm0, %v383_v22, %v385_v30  ;;  %v390_v33 = vsel %vm388_vm0, %v385_v30, %v387_v23 }
  0xb6   : > { %v393_v34 = vsel %vm1306_vm1, %v389_v32, 0.0  ;;  %v394_v35 = vsel %vm1310_vm2, %v390_v33, 0.0  ;;  %v656_v33 = vld [vmem:[#allocation2 + $0xc] sm:$0xf] }
  0xb7   : > { %v413_v27 = vpop.permute.xlu0 %412  ;;  %v397_v36 = vrot.slane %v393_v34, 4  ;;  %v398_v37 = vrot.slane %v394_v35, 4  ;;  %664 = vrot.lane.b32.xlu0 %v656_v33, %s1114_s29  ;;  %v681_v34 = vld [vmem:[#allocation2 + $0xc] sm:$0xf] }
  0xb8   : > { %v411_v40 = vpop.permute.xlu1 %410  ;;  %v1011_v35 = vld [vmem:[#allocation2 + $0xc] ss:$0 sps:$4 sm:$0xff]  }
  0xb9   : > { %401 = vst [vmem:[#allocation3 + $0x48] sm:$0xf0] %v397_v36  ;;  %402 = vst [vmem:[#allocation3 + $0x28] sm:$0xf0] %v398_v37  ;;  %v416_v43 = vsel %vm414_vm4, %v411_v40, %v413_v27  ;;  %v718_v36 = vld [vmem:[#allocation2 + $0xc] sm:$0xf] }
  0xba   : > { %v420_v47 = vsel %vm1324_vm6, %v416_v43, 0.0  ;;  %726 = vrot.lane.b32.xlu1 %v718_v36, %s1113_s12 }
  0xbb   : > { %v409_v31 = vpop.permute.xlu0 %408  ;;  %422 = vst [vmem:[#allocation3 + $0x20] sm:$0xf] %v420_v47  ;;  %689 = vrot.lane.b32.xlu0 %v681_v34, %s1116_s16 }
  0xbc   : > { %v415_v42 = vsel %vm414_vm4, %v409_v31, %v411_v40  ;;  %v353_v50 = vpop.permute.xlu1 %352  ;;  %v275_v31 = vld [vmem:[%s1485_s1] sm:$0xf] }
  0xbd   : > { %v419_v46 = vsel %vm1320_vm5, %v415_v42, 0.0 }
  0xbe   : > { %421 = vst [vmem:[#allocation3 + $0x8] sm:$0xf] %v419_v46 }
  0xbf   : > { %v450_v41 = vpop.permute.xlu0 %449  ;;  %709 = vrot.lane.b32.xlu0 %v1011_v35, %s1115_s14 }
  0xc0   : > { %v454_v44 = vsel %vm453_vm3, %v448_v19, %v450_v41  ;;  %v455_v45 = vsel %vm453_vm3, %v450_v41, %v452_v20  ;;  %v430_v53 = vpop.permute.xlu1 %429  ;;  %v467_v11 = vld [vmem:[#allocation3 + $0x28] sm:$0xff] }
  0xc1   : > { %v458_v48 = vsel %vm1306_vm1, %v454_v44, 0.0  ;;  %v459_v49 = vsel %vm1310_vm2, %v455_v45, 0.0  ;;  %v436_v55 = vsel %vm435_vm7, %v430_v53, %v432_v26  ;;  %v466_v13 = vld [vmem:[#allocation3 + $0x48] sm:$0xff] }
  0xc2   : > { %460 = vst [vmem:[#allocation3 + $0x40] sm:$0xf] %v458_v48  ;;  %461 = vst [vmem:[#allocation3 + $0x38] sm:$0xf] %v459_v49 }
  0xc3   : > { %v434_v51 = vpop.permute.xlu0 %433  ;;  %440 = vst [vmem:[#allocation3 + $0x8] sm:$0xf0] %v436_v55 }
  0xc4   : > { %v437_v52 = vsel %vm435_vm7, %v432_v26, %v434_v51  ;;  %v333_v61 = vpop.permute.xlu1 %332 }
  0xc5   : > { %441 = vst [vmem:[#allocation3 + $0x20] sm:$0xf0] %v437_v52 }
  0xc7   : > { %v355_v54 = vpop.permute.xlu0 %354 }
  0xc8   : > { %v358_v56 = vsel %vm356_vm8, %v353_v50, %v355_v54  ;;  %v331_v5 = vpop.permute.xlu1 %330  ;;  %v562_v54 = vld [vmem:[%s1488_s4] sm:$0xf] }
  0xc9   : > { %v471_v57 = vld [vmem:[#allocation3 + $0x38] sm:$0xf]  ;;  %v362_v58 = vsel %vm1324_vm6, %v358_v56, 0.0  ;;  %v470_v59 = vld [vmem:[#allocation3 + $0x40] sm:$0xf]  ;;  %v337_v7 = vsel %vm336_vm10, %v331_v5, %v333_v61 }
  0xca   : > { %935 = vmatprep.subr.msk.mxu0 %vm481_vm9, %v471_v57  ;;  %v366_v60 = vrot.slane %v362_v58, 4  ;;  %v468_v8 = vld [vmem:[#allocation3 + $0x8] sm:$0xff]  ;;  %v341_v10 = vsel %vm1306_vm1, %v337_v7, 0.0 }
  0xcb   : > { %936 = vmatpush1.msk.msra.mxu0 %vm481_vm9, %v470_v59  ;;  %v351_v62 = vpop.permute.xlu0 %350  ;;  %343 = vst [vmem:[#allocation3 + $0x18] sm:$0xf] %v341_v10 }
  0xcc   : > { %370 = vst [vmem:[#allocation3 + $0x10] sm:$0xf0] %v366_v60  ;;  %v357_v63 = vsel %vm356_vm8, %v351_v62, %v353_v50  ;;  %v469_v0 = vld [vmem:[#allocation3 + $0x20] sm:$0xff]  ;;  %v292_v14 = vpop.permute.xlu1 %291 }
  0xcd   : > { %v361_v2 = vsel %vm1320_vm5, %v357_v63, 0.0  ;;  %512 = vmatprep.subr.mxu0 %v469_v0 }
  0xce   : > { %v365_v4 = vrot.slane %v361_v2, 4  ;;  %513 = vmatpush1.msra.mxu0 %v468_v8 }
  0xcf   : > { %v335_v6 = vpop.permute.xlu0 %334  ;;  %514 = vmatprep.subr.mxu0 %v467_v11 }
  0xd0   : > { %369 = vst [vmem:[#allocation3 + $0x18] sm:$0xf0] %v365_v4  ;;  %v338_v9 = vsel %vm336_vm10, %v333_v61, %v335_v6  ;;  %515 = vmatpush1.msra.mxu0 %v466_v13  ;;  %v311_v18 = vpop.permute.xlu1 %310 }
  0xd1   : > { %v342_v12 = vsel %vm1310_vm2, %v338_v9, 0.0 }
  0xd2   : > { %344 = vst [vmem:[#allocation3 + $0x10] sm:$0xf] %v342_v12 }
  0xd3   : > { %v290_v15 = vpop.permute.xlu0 %289 }
  0xd4   : > { %v295_v16 = vsel %vm293_vm11, %v290_v15, %v292_v14  ;;  %v309_v24 = vpop.permute.xlu1 %308 }
  0xd5   : > { %v299_v17 = vsel %vm1324_vm6, %v295_v16, 0.0  ;;  %v315_v26 = vsel %vm314_vm12, %v309_v24, %v311_v18 }
  0xd6   : > { %301 = vst [vmem:[#allocation3] sm:$0xf] %v299_v17  ;;  %319 = vst [vmem:[#allocation3 + $0x30] sm:$0xf0] %v315_v26 }
  0xd7   : > { %v288_v19 = vpop.permute.xlu0 %287  ;;  %v464_v23 = vld [vmem:[#allocation3 + $0x18] sm:$0xff] }
  0xd8   : > { %v294_v20 = vsel %vm293_vm11, %v288_v19, %v290_v15 }
  0xd9   : > { %v298_v21 = vsel %vm1320_vm5, %v294_v20, 0.0  ;;  %v465_v22 = vld [vmem:[#allocation3 + $0x10] sm:$0xff] }
  0xda   : > { %300 = vst [vmem:[#allocation3 + $0x30] sm:$0xf] %v298_v21  ;;  %516 = vmatprep.subr.mxu0 %v465_v22 }
  0xdb   : > { %v313_v25 = vpop.permute.xlu0 %312  ;;  %517 = vmatpush1.msra.mxu0 %v464_v23 }
  0xdc   : > { %v316_v27 = vsel %vm314_vm12, %v311_v18, %v313_v25 }
  0xdd   : > { %320 = vst [vmem:[#allocation3] sm:$0xf0] %v316_v27 }
  0xe1   : > { %v462_v32 = vld [vmem:[#allocation3 + $0x30] sm:$0xff] }
  0xe4   : > { %v463_v30 = vld [vmem:[#allocation3] sm:$0xff] }
  0xe5   : > { %518 = vmatprep.subr.mxu0 %v463_v30 }
  0xe6   : > { %519 = vmatpush1.msra.mxu0 %v462_v32 }
  0xe7   : > { %937 = vmatmul.mubr.msk.f32.vlgmr.msra.gmra.mxu0 %vm477_vm13, %v275_v31 }
  0xe8   : > { %v475_v37 = vpop.permute.xlu0 %474 }
 0x129   : > { %v665_v57 = vpop.permute.xlu0 %664 }
 0x12c   : > { %v727_v59 = vpop.permute.xlu1 %726 }
 0x12d   : > { %v690_v58 = vpop.permute.xlu0 %689 }
 0x131   : > { %v710_v60 = vpop.permute.xlu0 %709 }
 0x1a7   : > { %v554_v40 = vpop.f32.mrf.mxu0 }
 0x1a8   : > { %v555_v41 = vadd.f32 %v554_v40, %v475_v37 }
 0x1a9   : > { %v556_v42 = vpop.f32.mrf.mxu0 }
 0x1aa   : > { %v557_v43 = vadd.f32 %v556_v42, %v475_v37  ;;  %v559_v44 = vmax.f32 %v555_v41, 0.0 }
 0x1ac   : > { %v560_v45 = vmax.f32 %v557_v43, 0.0  ;;  %v1016_v55 = vcombine.low %v559_v44, %v559_v44 }
 0x1ae   : > { %v565_v46 = vcombine.low %v559_v44, %v560_v45  ;;  %v1015_v47 = vcombine.low %v560_v45, %v560_v45 }
 0x1b0   : > { %567 = vst [vmem:[#allocation2 + $0x4] sm:$0xff] %v565_v46  ;;  %722 = vrot.lane.b32.xlu0 %v565_v46, %s1113_s12  ;;  %660 = vrot.lane.b32.xlu1 %v565_v46, %s1114_s29  ;;  %653 = vst [vmem:[#allocation3 + $0x48] sm:$0xf] %v565_v46 }
 0x1b1   : > { %654 = vst [vmem:[#allocation3 + $0x28] sm:$0xf] %v1015_v47 }
 0x1b4   : > { %685 = vrot.lane.b32.xlu0 %v565_v46, %s1116_s16  ;;  %707 = vrot.lane.b32.xlu1 %v565_v46, %s1115_s14 }
 0x1b7   : > { %v625_v48 = vld [vmem:[#allocation2 + $0x8] sm:$0xf]  ;;  %v605_v49 = vld [vmem:[#allocation2] sm:$0xff] }
 0x1b8   : > { %633 = vrot.lane.b32.xlu0 %v625_v48, %s1117_s25  ;;  %610 = vrot.lane.b32.xlu1 %v605_v49, %s1118_s26  ;;  %v569_v50 = vld [vmem:[#allocation2 + $0x8] sm:$0xf]  ;;  %v609_v52 = vcombine.high %v605_v49, %v605_v49  ;;  %v591_v56 = vcombine.low %v605_v49, %v605_v49 }
 0x1b9   : > { %v606_v51 = vld [vmem:[#allocation2 + $0x8] sm:$0xf] }
 0x1ba   : > { %v1014_v53 = vld [vmem:[#allocation2 + $0x8] ss:$0 sps:$4 sm:$0xff]  }
 0x1bc   : > { %629 = vrot.lane.b32.xlu0 %v605_v49, %s1117_s25  ;;  %577 = vrot.lane.b32.xlu1 %v569_v50, %s1119_s28 }
 0x1c0   : > { %614 = vrot.lane.b32.xlu0 %v606_v51, %s1118_s26  ;;  %595 = vrot.lane.b32.xlu1 %v605_v49, %s1120_s8 }
 0x1c4   : > { %724 = vrot.lane.b32.xlu1 %v1015_v47, %s1113_s12  ;;  %573 = vrot.lane.b32.xlu0 %v605_v49, %s1119_s28 }
 0x1c8   : > { %662 = vrot.lane.b32.xlu1 %v1015_v47, %s1114_s29  ;;  %575 = vrot.lane.b32.xlu0 %v609_v52, %s1119_s28 }
 0x1cc   : > { %687 = vrot.lane.b32.xlu1 %v1015_v47, %s1116_s16  ;;  %597 = vrot.lane.b32.xlu0 %v1014_v53, %s1120_s8  ;;  %s240_s16 = scalar_lea.vmem [#allocation7], %s933_s17 }
 0x1d0   : > { %631 = vrot.lane.b32.xlu1 %v609_v52, %s1117_s25  ;;  %748 = vperm.xlu0 %1004, %v562_v54   ;;  %s856_s25 = sshll.u32 %s240_s16, 4  ;;  %s857_s25 = int_to_ptr.vmem [resolvable:$true] %s856_s25 }
 0x1d1   : > { %s1045_s9 = scalar_lea.vmem %s857_s25, 128 }
 0x1d2   : > { %p1046_p11 = scmp.ne.s32.totalorder %s857_s25, %s1045_s9 }
 0x1d4   : > { %705 = vrot.lane.b32.xlu1 %v1016_v55, %s1115_s14  ;;  %s947_s14 = sshll.u32 %s1174_s22, 7  ;;  %p1047_p13 = pnand %p1046_p11, %p1508_p12 }
 0x1d5   : > { %s1122_s22 = smov [#allocation7]  }
 0x1d6   : > { %p1048_p1 = pneg %p1047_p13  ;;  %s1049_s17 = sshll.u32 %s1122_s22, 4  ;;  %s1050_s17 = int_to_ptr.vmem [resolvable:$false] %s1049_s17 }
 0x1d7   : > { %s1051_s10 = scalar_lea.vmem %s1050_s17, 256  ;;  %p1052_p3 = scmp.lt.s32.totalorder %s857_s25, %s1050_s17 }
 0x1d8   : > { %612 = vrot.lane.b32.xlu1 %v609_v52, %s1118_s26  ;;  %p1053_p5 = scmp.lt.s32.totalorder %s1051_s10, %s1045_s9 }
 0x1da   : > { %p1054_p8 = por %p1053_p5, %p1052_p3 }
 0x1dc   : > { %593 = vrot.lane.b32.xlu1 %v591_v56, %s1120_s8  ;;  %s854_s8 = scalar_lea.hbm %s1489_s5, %s947_s14  ;;  %p1055_p10 = pnand %p1054_p8, %p1048_p1 }
 0x222   : > { %v661_v61 = vpop.permute.xlu1 %660  ;;  %v723_v62 = vpop.permute.xlu0 %722 }
 0x226   : > { %v708_v63 = vpop.permute.xlu1 %707  ;;  %v686_v0 = vpop.permute.xlu0 %685 }
 0x227   : > { %v712_v2 = vsel %vm435_vm7, %v708_v63, %v710_v60  ;;  %v561_v60 = vld [vmem:[%s1487_s3] sm:$0xf] }
 0x228   : > { %716 = vst [vmem:[#allocation3 + $0x20] sm:$0xf0] %v712_v2 }
 0x22a   : > { %v611_v4 = vpop.permute.xlu1 %610  ;;  %v634_v5 = vpop.permute.xlu0 %633 }
 0x22e   : > { %v578_v6 = vpop.permute.xlu1 %577  ;;  %v630_v7 = vpop.permute.xlu0 %629 }
 0x232   : > { %v1396_v8 = vpop.permute.xlu1 %595  ;;  %v615_v9 = vpop.permute.xlu0 %614 }
 0x236   : > { %v725_v10 = vpop.permute.xlu1 %724  ;;  %v574_v11 = vpop.permute.xlu0 %573 }
 0x237   : > { %v728_v12 = vsel %vm453_vm3, %v723_v62, %v725_v10  ;;  %v729_v13 = vsel %vm453_vm3, %v725_v10, %v727_v59 }
 0x238   : > { %v732_v14 = vsel %vm1306_vm1, %v728_v12, 0.0  ;;  %v733_v15 = vsel %vm1310_vm2, %v729_v13, 0.0 }
 0x239   : > { %734 = vst [vmem:[#allocation3 + $0x40] sm:$0xf] %v732_v14  ;;  %735 = vst [vmem:[#allocation3 + $0x38] sm:$0xf] %v733_v15 }
 0x23a   : > { %v663_v16 = vpop.permute.xlu1 %662  ;;  %v576_v17 = vpop.permute.xlu0 %575 }
 0x23b   : > { %v666_v18 = vsel %vm388_vm0, %v661_v61, %v663_v16  ;;  %v667_v19 = vsel %vm388_vm0, %v663_v16, %v665_v57  ;;  %v579_v20 = vsel %vm293_vm11, %v574_v11, %v576_v17  ;;  %v580_v21 = vsel %vm293_vm11, %v576_v17, %v578_v6 }
 0x23c   : > { %v670_v22 = vsel %vm1306_vm1, %v666_v18, 0.0  ;;  %v671_v23 = vsel %vm1310_vm2, %v667_v19, 0.0  ;;  %v583_v24 = vsel %vm1320_vm5, %v579_v20, 0.0  ;;  %v584_v25 = vsel %vm1324_vm6, %v580_v21, 0.0 }
 0x23d   : > { %v674_v26 = vrot.slane %v670_v22, 4  ;;  %v675_v27 = vrot.slane %v671_v23, 4  ;;  %585 = vst [vmem:[#allocation3 + $0x30] sm:$0xf] %v583_v24  ;;  %586 = vst [vmem:[#allocation3] sm:$0xf] %v584_v25 }
 0x23e   : > { %v688_v30 = vpop.permute.xlu1 %687  ;;  %v598_v31 = vpop.permute.xlu0 %597 }
 0x23f   : > { %678 = vst [vmem:[#allocation3 + $0x48] sm:$0xf0] %v674_v26  ;;  %679 = vst [vmem:[#allocation3 + $0x28] sm:$0xf0] %v675_v27  ;;  %v691_v32 = vsel %vm414_vm4, %v686_v0, %v688_v30  ;;  %v692_v33 = vsel %vm414_vm4, %v688_v30, %v690_v58  ;;  %v600_v34 = vsel %vm314_vm12, %v1396_v8, %v598_v31 }
 0x240   : > { %v695_v35 = vsel %vm1320_vm5, %v691_v32, 0.0  ;;  %v696_v36 = vsel %vm1324_vm6, %v692_v33, 0.0  ;;  %604 = vst [vmem:[#allocation3] sm:$0xf0] %v600_v34  ;;  %v745_v37 = vld [vmem:[#allocation3 + $0x38] sm:$0xf] }
 0x241   : > { %v744_v40 = vld [vmem:[#allocation3 + $0x40] sm:$0xf]  ;;  %697 = vst [vmem:[#allocation3 + $0x8] sm:$0xf] %v695_v35  ;;  %698 = vst [vmem:[#allocation3 + $0x20] sm:$0xf] %v696_v36  ;;  %938 = vmatprep.subr.msk.mxu1 %vm481_vm9, %v745_v37 }
 0x242   : > { %v632_v41 = vpop.permute.xlu1 %631  ;;  %939 = vmatpush1.msk.msra.mxu1 %vm481_vm9, %v744_v40 }
 0x243   : > { %v635_v42 = vsel %vm356_vm8, %v630_v7, %v632_v41  ;;  %v636_v43 = vsel %vm356_vm8, %v632_v41, %v634_v5 }
 0x244   : > { %v639_v44 = vsel %vm1320_vm5, %v635_v42, 0.0  ;;  %v640_v45 = vsel %vm1324_vm6, %v636_v43, 0.0 }
 0x245   : > { %v643_v46 = vrot.slane %v639_v44, 4  ;;  %v644_v47 = vrot.slane %v640_v45, 4 }
 0x246   : > { %v706_v48 = vpop.permute.xlu1 %705  ;;  %v741_v57 = vld [vmem:[#allocation3 + $0x28] sm:$0xff] }
 0x247   : > { %647 = vst [vmem:[#allocation3 + $0x18] sm:$0xf0] %v643_v46  ;;  %648 = vst [vmem:[#allocation3 + $0x10] sm:$0xf0] %v644_v47  ;;  %v711_v49 = vsel %vm435_vm7, %v706_v48, %v708_v63  ;;  %v740_v58 = vld [vmem:[#allocation3 + $0x48] sm:$0xff]  ;;  %v737_v29 = vld [vmem:[#allocation3] sm:$0xff] }
 0x248   : > { %715 = vst [vmem:[#allocation3 + $0x8] sm:$0xf0] %v711_v49  ;;  %v743_v50 = vld [vmem:[#allocation3 + $0x20] sm:$0xff] }
 0x249   : > { %784 = vmatprep.subr.mxu1 %v743_v50 }
 0x24a   : > { %v613_v51 = vpop.permute.xlu1 %612 }
 0x24b   : > { %v616_v52 = vsel %vm336_vm10, %v611_v4, %v613_v51  ;;  %v617_v53 = vsel %vm336_vm10, %v613_v51, %v615_v9  ;;  %v749_v62 = vpop.permute.xlu0 %748 }
 0x24c   : > { %v620_v38 = vsel %vm1306_vm1, %v616_v52, 0.0  ;;  %v621_v39 = vsel %vm1310_vm2, %v617_v53, 0.0 }
 0x24d   : > { %622 = vst [vmem:[#allocation3 + $0x18] sm:$0xf] %v620_v38  ;;  %623 = vst [vmem:[#allocation3 + $0x10] sm:$0xf] %v621_v39 }
 0x24e   : > { %v594_v54 = vpop.permute.xlu1 %593 }
 0x24f   : > { %v599_v55 = vsel %vm314_vm12, %v594_v54, %v1396_v8  ;;  %v742_v56 = vld [vmem:[#allocation3 + $0x8] sm:$0xff] }
 0x250   : > { %603 = vst [vmem:[#allocation3 + $0x30] sm:$0xf0] %v599_v55  ;;  %785 = vmatpush1.msra.mxu1 %v742_v56 }
 0x251   : > { %786 = vmatprep.subr.mxu1 %v741_v57 }
 0x252   : > { %787 = vmatpush1.msra.mxu1 %v740_v58 }
 0x254   : > { %v739_v59 = vld [vmem:[#allocation3 + $0x10] sm:$0xff]  ;;  %v738_v28 = vld [vmem:[#allocation3 + $0x18] sm:$0xff] }
 0x255   : > { %788 = vmatprep.subr.mxu1 %v739_v59 }
 0x256   : > { %789 = vmatpush1.msra.mxu1 %v738_v28 }
 0x257   : > { %790 = vmatprep.subr.mxu1 %v737_v29  ;;  %v736_v61 = vld [vmem:[#allocation3 + $0x30] sm:$0xff] }
 0x258   : > { %791 = vmatpush1.msra.mxu1 %v736_v61 }
 0x259   : > { %940 = vmatmul.mubr.msk.f32.vlgmr.msra.gmra.mxu1 %vm477_vm13, %v561_v60 }
 0x319   : > { %v826_v63 = vpop.f32.mrf.mxu1 }
 0x31a   : > { %v827_v0 = vadd.f32 %v826_v63, %v749_v62 }
 0x31b   : > { %v828_v2 = vpop.f32.mrf.mxu1 }
 0x31c   : > { %v829_v4 = vadd.f32 %v828_v2, %v749_v62  ;;  %v834_v5 = vadd.f32 %v827_v0, %v1261_v1 }
 0x31e   : > { %v835_v6 = vadd.f32 %v829_v4, %v1268_v3 }
 0x320   : > { %v838_v7 = vcombine.low %v834_v5, %v835_v6 }
 0x322   : > { %840 = vst [vmem:[%s240_s16] sm:$0xff] %v838_v7 }
 0x323   : > { %1058 = shalt.err (!%p1055_p10)
}
 0x324   : > { %s1059_s11 = scalar_lea.hbm %s854_s8, 128  ;;  %s1063_s15 = scalar_lea.hbm %s1489_s5, 256 }
 0x325   : > { %p1060_p2 = scmp.ne.s32.totalorder %s854_s8, %s1059_s11  ;;  %p1064_p7 = scmp.lt.s32.totalorder %s854_s8, %s1489_s5 }
 0x326   : > { %p1065_p0 = scmp.lt.s32.totalorder %s1063_s15, %s1059_s11 }
 0x327   : > { %p1061_p4 = pnand %p1060_p2, %p1508_p12 }
 0x328   : > { %p1066_p6 = por %p1065_p0, %p1064_p7 }
 0x329   : > { %p1062_p9 = pneg %p1061_p4 }
 0x32b   : > { %p1067_p11 = pnand %p1066_p6, %p1062_p9 }
 0x32d   : > { %1070 = shalt.err (!%p1067_p11)
}
 0x32e   : > { %950 = dma.vmem_to_hbm [thread:$0]  (%p1508_p12), %s857_s25, 128, %s854_s8, %s842_s7  }
 0x32f PF: > { %s868_s14 = sand.u32 1, %s1097_s18   ;;  %p1509_p13 = scmp.ne.s32.totalorder %s1495_s6, 0 }
 0x330   : > { %p1510_p1 = scmp.ge.s32.totalorder %s1109_s21, 2  ;;  %s869_s16 = scalar_lea.sflag [#allocation6], %s868_s14 }
 0x332   : > { %p957_p3 = pnand %p1510_p1, %p1509_p13 }
 0x334   : > { %p958_p5 = pneg %p957_p3 }
 0x336   : > { %1092 = dma.done.wait (%p958_p5), %s869_s16, 128  }
 0x337   : > { %1094 = vsyncadd (%p958_p5), %s869_s16, 4294967168  ;;  %p18_p8 = scmp.ge.s32.totalorder %s1178_s24, 4   ;;  %s1511_s18 = smov %s1101_s19 }
 0x338   : > { %s1512_s19 = smov %s1105_s20  ;;  %s1513_s20 = smov %s1190_s27 }
 0x339   : > { %s1514_s21 = smov %s1178_s24  ;;  %20 = sbr.rel (!%p18_p8) target bundleno = 5 (0x5), region = 85 }
 0x33e   :  { %874 = vsyncpa [#allocation5], 1 }
 0x33f   :  { %876 = vsyncpa [#allocation5 + $0x1], 1 }
 0x340   :  { %877 = vsyncpa [#allocation6], 1 }
 0x341   :  { %879 = vsyncpa [#allocation6 + $0x1], 1 }

</bundles_post_ra>
